<compile_context>
chip_gen: v7x
topology: tpu7x:2x2x1
jax: 0.10.0
libtpu: 0.0.40
codegen_flags: <defaults>
</compile_context>

<pallas_src>
import jax
import jax.numpy as jnp
from jax.experimental import pallas as pl
from jax.experimental.pallas import tpu as pltpu


def _make_gather_kernel(col_ids):
    """Build a kernel body that copies the (static) columns `col_ids`."""
    col_ids = tuple(int(j) for j in col_ids)
    a = len(col_ids)
    contiguous = col_ids == tuple(range(col_ids[0], col_ids[0] + a))

    def kernel(x_ref, o_ref):
        x = x_ref[...]
        if contiguous or a == 1:
            # Single static lane slice (covers contiguous ranges and A == 1).
            o_ref[...] = x[:, col_ids[0]:col_ids[0] + a]
        else:
            # Arbitrary static indices: per-column static slices + lane concat.
            pieces = [x[:, j:j + 1] for j in col_ids]
            o_ref[...] = jnp.concatenate(pieces, axis=-1)

    return kernel


def _choose_tile_rows(N, D, A, itemsize, tile_rows=None):
    """Rows per grid step: multiple of the sublane count, VMEM-budgeted."""
    sub = {4: 8, 2: 16, 1: 32}.get(itemsize, 8)
    n_ceil = ((N + sub - 1) // sub) * sub
    if tile_rows is not None:
        tm = max(sub, (int(tile_rows) // sub) * sub)
        return min(tm, n_ceil)
    # Per-step VMEM ~ 2 (double buffer) * (TM*D + TM*A) * itemsize.
    # Keep under ~8 MiB so it comfortably fits the default scoped VMEM limit on
    # every generation (v7x: 64 MiB physical / 32 MiB default scoped).
    budget = 8 * 1024 * 1024
    tm = budget // (2 * (D + A) * itemsize)
    tm = max(sub, min(1024, tm))
    tm = (tm // sub) * sub
    return min(tm, n_ceil)


def slice_X_pallas(X, active_idx, *, tile_rows=None):
    """Pallas equivalent of X[:, active_idx] for a 2D X."""
    N, D = X.shape
    idx = [int(j) for j in active_idx]
    A = len(idx)

    # Identity slice is the most common case (active_dims defaulted): zero cost.
    if A == D and idx == list(range(D)):
        return X

    itemsize = jnp.dtype(X.dtype).itemsize
    tm = _choose_tile_rows(N, D, A, itemsize, tile_rows)
    grid = (pl.cdiv(N, tm),)  # tail tile handled by Pallas' automatic masking

    return pl.pallas_call(
        _make_gather_kernel(idx),
        out_shape=jax.ShapeDtypeStruct((N, A), X.dtype),
        grid=grid,
        in_specs=[pl.BlockSpec((tm, D), lambda i: (i, 0))],
        out_specs=pl.BlockSpec((tm, A), lambda i: (i, 0)),
        compiler_params=pltpu.CompilerParams(
            dimension_semantics=("parallel",),  # rows independent -> megacore
        ),
        cost_estimate=pl.CostEstimate(
            flops=0,
            transcendentals=0,
            bytes_accessed=N * D * itemsize + N * A * itemsize,
        ),
    )(X)


class Kernel:
    """JAX/Pallas port of the pyro GP base Kernel."""

    def __init__(self, input_dim, active_dims=None, name=None):
        if active_dims is None:
            active_dims = list(range(input_dim))  # slice(input_dim) equivalent
        elif input_dim != len(active_dims):
            raise ValueError(
                "Input size and the length of active dimensionals should be equal."
            )
        self.input_dim = input_dim
        self.active_dims = list(active_dims)
        self.name = name

    def forward(self, X, Z=None):
        # TODO(synk): forward is abstract in the PyTorch base class (raises
        # NotImplementedError); concrete covariance kernels subclass this.
        raise NotImplementedError

    def _slice_X(self, X):
        if X.ndim == 2:
            return slice_X_pallas(X, self.active_dims)
        elif X.ndim == 1:
            return X[:, None]  # trivial reshape glue; no kernel needed
        else:
            raise ValueError("Input X must be either 1 or 2 dimensional.")


if __name__ == "__main__":
    key = jax.random.PRNGKey(0)

    # 2D input, strided active_dims, N not a multiple of the tile:
    # exercises the tiled grid + masked tail path.
    N, D = 20, 16
    X = jax.random.normal(key, (N, D), dtype=jnp.float32)
    active_dims = [0, 2, 4, 6, 8, 10, 12, 14]
    ref = X[:, jnp.asarray(active_dims)]

    out = jax.block_until_ready(slice_X_pallas(X, active_dims, tile_rows=8))
    assert out.shape == (N, len(active_dims)), out.shape
    assert jnp.array_equal(out, ref), "mismatch vs reference slice (strided, tiled)"

    # Same thing through the module API with the default (VMEM-budgeted) tile.
    kern = Kernel(input_dim=len(active_dims), active_dims=active_dims, name="base")
    out2 = jax.block_until_ready(kern._slice_X(X))
    assert jnp.array_equal(out2, ref), "mismatch vs reference slice (module path)"

    # Contiguous subset -> single static lane slice inside the kernel.
    cont_dims = list(range(3, 11))
    kern_c = Kernel(input_dim=len(cont_dims), active_dims=cont_dims)
    out3 = jax.block_until_ready(kern_c._slice_X(X))
    assert jnp.array_equal(out3, X[:, 3:11]), "mismatch vs reference slice (contiguous)"

    # Identity slice -> early-out, no kernel launch.
    kern_id = Kernel(input_dim=D)
    out4 = kern_id._slice_X(X)
    assert out4 is X or jnp.array_equal(out4, X)

    # 1D path (glue only).
    x1d = jax.random.normal(jax.random.PRNGKey(1), (N,), dtype=jnp.float32)
    out1d = jax.block_until_ready(kern_id._slice_X(x1d))
    assert out1d.shape == (N, 1)

    print("KERNEL_OK")
</pallas_src>

<mosaic_0001>
module attributes {stable_mosaic.version = 11 : i64} {
  func.func @kernel(%arg0: i32, %arg1: memref<8x16xf32, #tpu.memory_space<vmem>>, %arg2: memref<8x8xf32, #tpu.memory_space<vmem>>) attributes {dimension_semantics = [#tpu.dimension_semantics<parallel>], iteration_bounds = array<i64: 3>, scalar_prefetch = 0 : i64, scratch_operands = 0 : i64, tpu.core_type = #tpu.core_type<tc>, window_params = [{transform_indices = @transform_0, window_bounds = array<i64: 8, 16>}, {transform_indices = @transform_1, window_bounds = array<i64: 8, 8>}]} {
    %c0 = arith.constant 0 : index
    %c0_0 = arith.constant 0 : index
    %0 = vector.load %arg1[%c0, %c0_0] : memref<8x16xf32, #tpu.memory_space<vmem>>, vector<8x16xf32>
    %1 = vector.extract_strided_slice %0 {offsets = [0, 0], sizes = [8, 1], strides = [1, 1]} : vector<8x16xf32> to vector<8x1xf32>
    %2 = vector.extract_strided_slice %0 {offsets = [0, 2], sizes = [8, 1], strides = [1, 1]} : vector<8x16xf32> to vector<8x1xf32>
    %3 = vector.extract_strided_slice %0 {offsets = [0, 4], sizes = [8, 1], strides = [1, 1]} : vector<8x16xf32> to vector<8x1xf32>
    %4 = vector.extract_strided_slice %0 {offsets = [0, 6], sizes = [8, 1], strides = [1, 1]} : vector<8x16xf32> to vector<8x1xf32>
    %5 = vector.extract_strided_slice %0 {offsets = [0, 8], sizes = [8, 1], strides = [1, 1]} : vector<8x16xf32> to vector<8x1xf32>
    %6 = vector.extract_strided_slice %0 {offsets = [0, 10], sizes = [8, 1], strides = [1, 1]} : vector<8x16xf32> to vector<8x1xf32>
    %7 = vector.extract_strided_slice %0 {offsets = [0, 12], sizes = [8, 1], strides = [1, 1]} : vector<8x16xf32> to vector<8x1xf32>
    %8 = vector.extract_strided_slice %0 {offsets = [0, 14], sizes = [8, 1], strides = [1, 1]} : vector<8x16xf32> to vector<8x1xf32>
    %9 = tpu.concatenate %1, %2, %3, %4, %5, %6, %7, %8 in 1 : vector<8x1xf32>, vector<8x1xf32>, vector<8x1xf32>, vector<8x1xf32>, vector<8x1xf32>, vector<8x1xf32>, vector<8x1xf32>, vector<8x1xf32> -> vector<8x8xf32>
    %c0_1 = arith.constant 0 : index
    %c0_2 = arith.constant 0 : index
    %10 = vector.load %arg2[%c0_1, %c0_2] : memref<8x8xf32, #tpu.memory_space<vmem>>, vector<8x8xf32>
    tpu.vector_store %arg2[%c0_1, %c0_2], %9 {strides = array<i32>} : memref<8x8xf32, #tpu.memory_space<vmem>>, vector<8x8xf32>,
    return
  }
  func.func @transform_0(%arg0: i32) -> (i32, i32) {
    %c0_i32 = arith.constant 0 : i32
    %c0_i32_0 = arith.constant 0 : i32
    return %arg0, %c0_i32 : i32, i32
  }
  func.func @transform_1(%arg0: i32) -> (i32, i32) {
    %c0_i32 = arith.constant 0 : i32
    %c0_i32_0 = arith.constant 0 : i32
    return %arg0, %c0_i32 : i32, i32
  }
}

</mosaic_0001>

<bundles_post_ra>
// kernel: tpu_custom_call.1
= control target key start
LH: loop header
LB: loop body
LE: loop exit
PB: predicated region body
PF: predicated region fallthrough
CT: control target
= control target key end

     0   :  { %s253_s6 = smov 0   ;;  %s277_s0 = inlined_call_operand.vmem [shape: f32[20,16], index: 0, kind: input, shape index: {}]   ;;  %s278_s1 = inlined_call_operand.vmem [shape: f32[20,8], index: 1, kind: output, shape index: {}]  }
   0x1 LB: > { %s204_s7 = sadd.s32 4294967295, %s234_s6   ;;  %p208_p0 = scmp.ge.s32.totalorder %s234_s6, 1  ;;  %s234_s6 = sphi %s253_s6, %s11_s6  }
   0x2   : > { %p86_p1 = scmp.lt.s32.totalorder %s234_s6, 4 }
   0x4   : > { %p87_p2 = pnand %p208_p0, %p86_p1 }
   0x5   : > { %p104_p3 = scmp.lt.s32.totalorder (!%p87_p2), %s204_s7, 2  ;;  %s236_s12 = smov (!%p87_p2), 127   ;;  %vm135_vm0 = vcmask (!%p87_p2), 7168   ;;  %vm137_vm1 = vcmask (!%p87_p2), 15360   ;;  %vm139_vm2 = vcmask (!%p87_p2), 23552   ;;  %vm141_vm3 = vcmask (!%p87_p2), 31744  }
   0x6   : > { %90 = sbr.rel (%p87_p2) target bundleno = 146 (0x92), region = 24  ;;  %s237_s13 = smov (!%p87_p2), 125   ;;  %vm143_vm4 = vcmask (!%p87_p2), 39936   ;;  %vm145_vm5 = vcmask (!%p87_p2), 48128   ;;  %vm147_vm6 = vcmask (!%p87_p2), 56320   ;;  %vm149_vm7 = vcmask (!%p87_p2), 64512  }
   0x7   : > { %s238_s14 = smov (!%p87_p2), 126   ;;  %s239_s15 = smov (!%p87_p2), 124  }
   0x8   : > { %s240_s16 = smov (!%p87_p2), 123   ;;  %s241_s17 = smov (!%p87_p2), 122  }
   0x9   : > { %s242_s18 = smov (!%p87_p2), 121  }
   0xd   : > { %s280_s7 = smov (!%p104_p3, %s204_s7), 2 }
   0xe   : > { %s209_s8 = sshll.u32 %s280_s7, 3 }
   0xf   : > { %s107_s11 = scalar_lea.vmem %s277_s0, %s209_s8  ;;  %s111_s21 = scalar_lea.vmem %s278_s1, %s209_s8 }
  0x10   : > { %v112_v0 = vld [vmem:[%s107_s11] sm:$0xff] }
  0x11   : > { %114 = vrot.lane.b32.xlu0 %v112_v0, %s236_s12  ;;  %120 = vrot.lane.b32.xlu1 %v112_v0, %s237_s13 }
  0x15   : > { %117 = vrot.lane.b32.xlu0 %v112_v0, %s238_s14  ;;  %123 = vrot.lane.b32.xlu1 %v112_v0, %s239_s15 }
  0x19   : > { %126 = vrot.lane.b32.xlu0 %v112_v0, %s240_s16  ;;  %129 = vrot.lane.b32.xlu1 %v112_v0, %s241_s17 }
  0x1d   : > { %132 = vrot.lane.b32.xlu0 %v112_v0, %s242_s18 }
  0x83   : > { %v115_v1 = vpop.permute.xlu0 %114  ;;  %v121_v2 = vpop.permute.xlu1 %120 }
  0x84   : > { %v136_v3 = vsel %vm135_vm0, %v112_v0, %v115_v1 }
  0x87   : > { %v118_v4 = vpop.permute.xlu0 %117  ;;  %v124_v5 = vpop.permute.xlu1 %123 }
  0x88   : > { %v138_v6 = vsel %vm137_vm1, %v136_v3, %v118_v4 }
  0x89   : > { %v140_v7 = vsel %vm139_vm2, %v138_v6, %v121_v2 }
  0x8a   : > { %v142_v8 = vsel %vm141_vm3, %v140_v7, %v124_v5 }
  0x8b   : > { %v127_v9 = vpop.permute.xlu0 %126  ;;  %v130_v11 = vpop.permute.xlu1 %129 }
  0x8c   : > { %v144_v10 = vsel %vm143_vm4, %v142_v8, %v127_v9 }
  0x8d   : > { %v146_v12 = vsel %vm145_vm5, %v144_v10, %v130_v11 }
  0x8f   : > { %v133_v13 = vpop.permute.xlu0 %132 }
  0x90   : > { %v148_v14 = vsel %vm147_vm6, %v146_v12, %v133_v13 }
  0x91   : > { %150 = vst.msk [vmem:[%s111_s21] sm:$0xff] %vm149_vm7, %v148_v14 }
  0x92 PF: > { %s11_s6 = sadd.s32 1, %s234_s6  }
  0x93   : > { %p8_p4 = scmp.ge.s32.totalorder %s11_s6, 5  }
  0x95   :  { %10 = sbr.rel (!%p8_p4) target bundleno = 1 (0x1), region = 54 }

</bundles_post_ra>
